<compile_context>
chip_gen: v6e
topology: v6e:2x2x1
jax: 0.10.0
libtpu: 0.0.40
codegen_flags: <defaults>
</compile_context>

<pallas_src>
import functools

import jax
import jax.numpy as jnp
from jax.experimental import pallas as pl
from jax.experimental.pallas import tpu as pltpu

LANES = 128
BLOCK_ROWS = 2048  # 2048 x 128 f32 = 1 MiB per input per buffer


def _rmse_partial_kernel(yhat_ref, y_ref, out_ref, acc_ref, *,
                         total_rows, block_rows, steps_per_core, needs_mask):
    j = pl.program_id(1)

    @pl.when(j == 0)
    def _():
        acc_ref[...] = jnp.zeros_like(acc_ref)

    d = yhat_ref[...].astype(jnp.float32) - y_ref[...].astype(jnp.float32)
    dd = d * d

    if needs_mask:
        # Mask rows beyond the real data: covers the partial last block and
        # over-provisioned grid steps whose (clamped) block index re-reads the
        # last block (their unclamped `blk` places every row past total_rows).
        c = pl.program_id(0)
        blk = c * steps_per_core + j
        row_ids = jax.lax.broadcasted_iota(jnp.int32, dd.shape, 0)
        valid = (blk * block_rows + row_ids) < total_rows
        dd = jnp.where(valid, dd, 0.0)

    acc_ref[...] += dd

    @pl.when(j == pl.num_programs(1) - 1)
    def _():
        # Single sublane (XLU) reduce per core; the cross-lane combine happens
        # in the wrapper together with the other core's partial.
        out_ref[...] = jnp.sum(acc_ref[...], axis=0)[None, None, :]


def rmse_loss(yhat, y, eps=1e-6):
    """Pallas equivalent of RMSELoss.forward: sqrt(mean((yhat - y)**2) + eps)."""
    assert yhat.shape == y.shape, "yhat and y must have the same shape"
    n_elem = int(yhat.size)
    if n_elem == 0:
        return jnp.float32(float("nan"))  # matches torch MSELoss on empty (0/0)

    def _prep(a):
        dt = a.dtype if jnp.issubdtype(a.dtype, jnp.floating) else jnp.float32
        return jnp.ravel(a).astype(dt)

    yhat_f = _prep(yhat)
    y_f = _prep(y)

    # Only the <128-element ragged tail is padded (needed for the lane-dense
    # 2D reshape); zeros in both inputs contribute 0 to the squared-diff sum.
    pad = (-n_elem) % LANES
    if pad:
        yhat_f = jnp.pad(yhat_f, (0, pad))
        y_f = jnp.pad(y_f, (0, pad))
    rows = (n_elem + pad) // LANES

    yhat2d = yhat_f.reshape(rows, LANES)
    y2d = y_f.reshape(rows, LANES)

    # Small-input fast path: a single full-array block (grid of one step).
    block_rows = min(BLOCK_ROWS, rows)
    num_blocks = pl.cdiv(rows, block_rows)
    num_cores = 2 if num_blocks >= 2 else 1        # v7x megacore split
    steps_per_core = pl.cdiv(num_blocks, num_cores)
    overprovisioned = (num_cores * steps_per_core) != num_blocks
    needs_mask = (num_cores * steps_per_core * block_rows) != rows

    if overprovisioned:
        def in_map(c, j):
            return (jnp.minimum(c * steps_per_core + j, num_blocks - 1), 0)
    else:
        def in_map(c, j):
            return (c * steps_per_core + j, 0)

    kernel = functools.partial(
        _rmse_partial_kernel,
        total_rows=rows,
        block_rows=block_rows,
        steps_per_core=steps_per_core,
        needs_mask=needs_mask,
    )

    partials = pl.pallas_call(
        kernel,
        out_shape=jax.ShapeDtypeStruct((num_cores, 1, LANES), jnp.float32),
        grid_spec=pltpu.PrefetchScalarGridSpec(
            num_scalar_prefetch=0,
            grid=(num_cores, steps_per_core),
            in_specs=[
                pl.BlockSpec((block_rows, LANES), in_map),
                pl.BlockSpec((block_rows, LANES), in_map),
            ],
            out_specs=pl.BlockSpec((1, 1, LANES), lambda c, j: (c, 0, 0)),
            scratch_shapes=[pltpu.VMEM((block_rows, LANES), jnp.float32)],
        ),
        compiler_params=pltpu.CompilerParams(
            dimension_semantics=("parallel", "arbitrary"),
        ),
    )(yhat2d, y2d)

    ssq = jnp.sum(partials)
    return jnp.sqrt(ssq / jnp.float32(n_elem) + jnp.float32(eps))


if __name__ == "__main__":
    def ref_rmse(a, b, eps=1e-6):
        a32 = a.astype(jnp.float32)
        b32 = b.astype(jnp.float32)
        return jnp.sqrt(jnp.mean((a32 - b32) ** 2) + eps)

    key = jax.random.PRNGKey(0)

    # Primary small NCHW example (B=2, C=4, H=W=16).
    k1, k2 = jax.random.split(key)
    yhat = jax.random.normal(k1, (2, 4, 16, 16), dtype=jnp.float32)
    y = jax.random.normal(k2, (2, 4, 16, 16), dtype=jnp.float32)
    loss = rmse_loss(yhat, y)
    jax.block_until_ready(loss)
    assert jnp.allclose(loss, ref_rmse(yhat, y), rtol=1e-5, atol=1e-6), (
        loss, ref_rmse(yhat, y))

    # Ragged element count (not a multiple of 128) -> exercises tail pad path.
    k3, k4 = jax.random.split(k2)
    a = jax.random.normal(k3, (3, 5, 7), dtype=jnp.float32)
    b = jax.random.normal(k4, (3, 5, 7), dtype=jnp.float32)
    loss2 = rmse_loss(a, b)
    jax.block_until_ready(loss2)
    assert jnp.allclose(loss2, ref_rmse(a, b), rtol=1e-5, atol=1e-6), (
        loss2, ref_rmse(a, b))

    # Multi-block + 2-way core split + masked partial last block.
    k5, k6 = jax.random.split(k4)
    c = jax.random.normal(k5, (2, 4, 128, 260), dtype=jnp.float32)
    d = jax.random.normal(k6, (2, 4, 128, 260), dtype=jnp.float32)
    loss3 = rmse_loss(c, d)
    jax.block_until_ready(loss3)
    assert jnp.allclose(loss3, ref_rmse(c, d), rtol=1e-5, atol=1e-6), (
        loss3, ref_rmse(c, d))

    # bf16 inputs stream natively (half the HBM bytes) and upcast in-kernel.
    k7, k8 = jax.random.split(k6)
    e = jax.random.normal(k7, (2, 4, 64, 64), dtype=jnp.bfloat16)
    f = jax.random.normal(k8, (2, 4, 64, 64), dtype=jnp.bfloat16)
    loss4 = rmse_loss(e, f)
    jax.block_until_ready(loss4)
    assert jnp.allclose(loss4, ref_rmse(e, f), rtol=1e-3, atol=1e-3), (
        loss4, ref_rmse(e, f))

    print("KERNEL_OK")
</pallas_src>

<mosaic_0001>
module attributes {stable_mosaic.version = 11 : i64} {
  func.func @_rmse_partial_kernel(%arg0: i32, %arg1: i32, %arg2: memref<16x128xf32, #tpu.memory_space<vmem>>, %arg3: memref<16x128xf32, #tpu.memory_space<vmem>>, %arg4: memref<1x1x128xf32, #tpu.memory_space<vmem>>, %arg5: memref<16x128xf32, #tpu.memory_space<vmem>>) attributes {dimension_semantics = [#tpu.dimension_semantics<parallel>, #tpu.dimension_semantics<arbitrary>], iteration_bounds = array<i64: 1, 1>, scalar_prefetch = 0 : i64, scratch_operands = 1 : i64, tpu.core_type = #tpu.core_type<tc>, window_params = [{transform_indices = @transform_0, window_bounds = array<i64: 16, 128>}, {transform_indices = @transform_1, window_bounds = array<i64: 16, 128>}, {transform_indices = @transform_2, window_bounds = array<i64: 1, 1, 128>}]} {
    %c0_i32 = arith.constant 0 : i32
    %0 = arith.cmpi eq, %arg1, %c0_i32 : i32
    %1 = arith.extui %0 : i1 to i32
    %c0_i32_0 = arith.constant 0 : i32
    %2 = arith.cmpi ne, %1, %c0_i32_0 : i32
    scf.if %2 {
      %cst = arith.constant 0.000000e+00 : f32
      %13 = vector.broadcast %cst : f32 to vector<16x128xf32>
      %c0_10 = arith.constant 0 : index
      %c0_11 = arith.constant 0 : index
      %14 = vector.load %arg5[%c0_10, %c0_11] : memref<16x128xf32, #tpu.memory_space<vmem>>, vector<16x128xf32>
      tpu.vector_store %arg5[%c0_10, %c0_11], %13 {strides = array<i32>} : memref<16x128xf32, #tpu.memory_space<vmem>>, vector<16x128xf32>,
    } else {
    }
    %c0 = arith.constant 0 : index
    %c0_1 = arith.constant 0 : index
    %3 = vector.load %arg2[%c0, %c0_1] : memref<16x128xf32, #tpu.memory_space<vmem>>, vector<16x128xf32>
    %c0_2 = arith.constant 0 : index
    %c0_3 = arith.constant 0 : index
    %4 = vector.load %arg3[%c0_2, %c0_3] : memref<16x128xf32, #tpu.memory_space<vmem>>, vector<16x128xf32>
    %5 = arith.subf %3, %4 : vector<16x128xf32>
    %6 = arith.mulf %5, %5 : vector<16x128xf32>
    %c0_4 = arith.constant 0 : index
    %c0_5 = arith.constant 0 : index
    %7 = vector.load %arg5[%c0_4, %c0_5] : memref<16x128xf32, #tpu.memory_space<vmem>>, vector<16x128xf32>
    %8 = arith.addf %7, %6 : vector<16x128xf32>
    %c0_6 = arith.constant 0 : index
    %c0_7 = arith.constant 0 : index
    %9 = vector.load %arg5[%c0_6, %c0_7] : memref<16x128xf32, #tpu.memory_space<vmem>>, vector<16x128xf32>
    tpu.vector_store %arg5[%c0_6, %c0_7], %8 {strides = array<i32>} : memref<16x128xf32, #tpu.memory_space<vmem>>, vector<16x128xf32>,
    %c0_i32_8 = arith.constant 0 : i32
    %10 = arith.cmpi eq, %arg1, %c0_i32_8 : i32
    %11 = arith.extui %10 : i1 to i32
    %c0_i32_9 = arith.constant 0 : i32
    %12 = arith.cmpi ne, %11, %c0_i32_9 : i32
    scf.if %12 {
      %c0_10 = arith.constant 0 : index
      %c0_11 = arith.constant 0 : index
      %13 = vector.load %arg5[%c0_10, %c0_11] : memref<16x128xf32, #tpu.memory_space<vmem>>, vector<16x128xf32>
      %cst = arith.constant dense<0.000000e+00> : vector<128xf32>
      %14 = vector.multi_reduction <add>, %13, %cst [0] : vector<16x128xf32> to vector<128xf32>
      %15 = vector.shape_cast %14 : vector<128xf32> to vector<1x1x128xf32>
      %c0_12 = arith.constant 0 : index
      %c0_13 = arith.constant 0 : index
      %c0_14 = arith.constant 0 : index
      %16 = vector.load %arg4[%c0_12, %c0_13, %c0_14] : memref<1x1x128xf32, #tpu.memory_space<vmem>>, vector<1x1x128xf32>
      tpu.vector_store %arg4[%c0_12, %c0_13, %c0_14], %15 {strides = array<i32>} : memref<1x1x128xf32, #tpu.memory_space<vmem>>, vector<1x1x128xf32>,
    } else {
    }
    return
  }
  func.func @transform_0(%arg0: i32, %arg1: i32) -> (i32, i32) {
    %c1_i32 = arith.constant 1 : i32
    %0 = arith.muli %arg0, %c1_i32 : i32
    %1 = arith.addi %0, %arg1 : i32
    %c0_i32 = arith.constant 0 : i32
    %c0_i32_0 = arith.constant 0 : i32
    return %1, %c0_i32 : i32, i32
  }
  func.func @transform_1(%arg0: i32, %arg1: i32) -> (i32, i32) {
    %c1_i32 = arith.constant 1 : i32
    %0 = arith.muli %arg0, %c1_i32 : i32
    %1 = arith.addi %0, %arg1 : i32
    %c0_i32 = arith.constant 0 : i32
    %c0_i32_0 = arith.constant 0 : i32
    return %1, %c0_i32 : i32, i32
  }
  func.func @transform_2(%arg0: i32, %arg1: i32) -> (i32, i32, i32) {
    %c0_i32 = arith.constant 0 : i32
    %c0_i32_0 = arith.constant 0 : i32
    %c0_i32_1 = arith.constant 0 : i32
    return %arg0, %c0_i32, %c0_i32_0 : i32, i32, i32
  }
}

</mosaic_0001>

<bundles_post_ra>
// kernel: tpu_custom_call.1
= control target key start
LH: loop header
LB: loop body
LE: loop exit
PB: predicated region body
PF: predicated region fallthrough
CT: control target
= control target key end

     0   :  { %7 = vsyncpa [#allocation4], 0  ;;  %s201_s0 = inlined_call_operand.hbm [shape: f32[16,128], index: 0, kind: input, shape index: {}]   ;;  %s202_s1 = inlined_call_operand.hbm [shape: f32[16,128], index: 1, kind: input, shape index: {}]   ;;  %s203_s2 = inlined_call_operand.hbm [shape: f32[1,1,128], index: 2, kind: output, shape index: {}]  }
   0x1   :  { %8 = vsyncpa [#allocation7], 0 }
   0x2   :  { %9 = vsyncpa [#allocation5], 0  ;;  %s172_s9 = smov [#allocation3]  }
   0x3   :  { %s19_s10 = sshll.u32 %s172_s9, 4  ;;  %s20_s10 = int_to_ptr.vmem [resolvable:$true] %s19_s10 }
   0x4   :  { %s114_s11 = scalar_lea.vmem %s20_s10, 256  ;;  %p119_p1 = scmp.lt.s32.totalorder %s20_s10, %s20_s10 }
   0x5   :  { %p115_p0 = scmp.ne.s32.totalorder %s20_s10, %s114_s11  ;;  %p120_p2 = scmp.lt.s32.totalorder %s114_s11, %s114_s11 }
   0x7   :  { %p121_p3 = por %p120_p2, %p119_p1 }
   0x9   :  { %p122_p4 = pnand %p121_p3, %p115_p0 }
   0xb   :  { %125 = shalt.err (!%p122_p4)
}
   0xc   :  { %s173_s12 = smov 128   ;;  %s174_s13 = smov 8  }
   0xd   :  { %25 = dma.hbm_to_vmem [thread:$0]  %s201_s0, 256, %s20_s10, [#allocation4], %s173_s12, %s173_s12, %s174_s13  }
   0xe   :  { %s175_s16 = smov [#allocation6]  }
   0xf   :  { %s35_s17 = sshll.u32 %s175_s16, 4  ;;  %s36_s17 = int_to_ptr.vmem [resolvable:$true] %s35_s17 }
  0x10   :  { %s134_s18 = scalar_lea.vmem %s36_s17, 256  ;;  %p139_p6 = scmp.lt.s32.totalorder %s36_s17, %s36_s17 }
  0x11   :  { %p135_p5 = scmp.ne.s32.totalorder %s36_s17, %s134_s18  ;;  %p140_p7 = scmp.lt.s32.totalorder %s134_s18, %s134_s18 }
  0x13   :  { %p141_p8 = por %p140_p7, %p139_p6 }
  0x15   :  { %p142_p9 = pnand %p141_p8, %p135_p5 }
  0x17   :  { %145 = shalt.err (!%p142_p9)
}
  0x18   :  { %41 = dma.hbm_to_vmem [thread:$0]  %s202_s1, 256, %s36_s17, [#allocation7], %s173_s12, %s173_s12, %s174_s13  }
  0x19   :  { %166 = dma.done.wait [#allocation4], 256  }
  0x1a   :  { %167 = vsyncadd [#allocation4], 4294967040 }
  0x1b   :  { %168 = dma.done.wait [#allocation7], 256  }
  0x1c   :  { %169 = vsyncadd [#allocation7], 4294967040  ;;  %v58_v0 = vld [vmem:[#allocation3] sm:$0xff]  ;;  %v59_v1 = vld [vmem:[#allocation3 + $0x8] sm:$0xff]  ;;  %s176_s0 = smov [#allocation8]  }
  0x1d   :  { %v60_v2 = vld [vmem:[#allocation6] sm:$0xff]  ;;  %v61_v3 = vld [vmem:[#allocation6 + $0x8] sm:$0xff]  ;;  %s91_s21 = sshll.u32 %s176_s0, 4  ;;  %s92_s21 = int_to_ptr.vmem [resolvable:$true] %s91_s21 }
  0x1e   :  { %v62_v4 = vsub.f32 %v58_v0, %v60_v2  ;;  %v63_v5 = vsub.f32 %v59_v1, %v61_v3  ;;  %s146_s1 = scalar_lea.vmem %s92_s21, 16  ;;  %s150_s22 = scalar_lea.vmem %s92_s21, 32 }
  0x1f   :  { %p147_p10 = scmp.ne.s32.totalorder %s92_s21, %s146_s1  ;;  %p151_p11 = scmp.lt.s32.totalorder %s92_s21, %s92_s21 }
  0x20   :  { %v64_v6 = vmul.f32 %v62_v4, %v62_v4  ;;  %v65_v7 = vmul.f32 %v63_v5, %v63_v5  ;;  %p152_p12 = scmp.lt.s32.totalorder %s150_s22, %s146_s1 }
  0x22   :  { %v77_v8 = vadd.f32 %v65_v7, %v64_v6  ;;  %p153_p13 = por %p152_p12, %p151_p11 }
  0x24   :  { %v78_v9 = vrot.slane %v77_v8, 4  ;;  %p154_p0 = pnand %p153_p13, %p147_p10 }
  0x26   :  { %v79_v10 = vadd.f32 %v78_v9, %v77_v8 }
  0x28   :  { %v80_v11 = vrot.slane %v79_v10, 2 }
  0x2a   :  { %v81_v12 = vadd.f32 %v80_v11, %v79_v10 }
  0x2c   :  { %v82_v13 = vrot.slane %v81_v12, 1 }
  0x2e   :  { %v83_v14 = vadd.f32 %v82_v13, %v81_v12 }
  0x30   :  { %84 = vst [vmem:[#allocation8] sm:$0x1] %v83_v14 }
  0x31   :  { %157 = shalt.err (!%p154_p0)
}
  0x32   :  { %94 = dma.vmem_to_hbm [thread:$0]  %s92_s21, 16, %s203_s2, [#allocation5]  }
  0x33   :  { %170 = dma.done.wait [#allocation5], 16  }
  0x34   :  { %171 = vsyncadd [#allocation5], 4294967280 }
  0x35   :  { %98 = vsyncpa [#allocation4], 1 }
  0x36   :  { %99 = vsyncpa [#allocation7], 1 }
  0x37   :  { %100 = vsyncpa [#allocation5], 1 }

</bundles_post_ra>
